<compile_context>
chip_gen: v5e
topology: v5e:2x2
jax: 0.10.0
libtpu: 0.0.40
codegen_flags: <defaults>
</compile_context>

<pallas_src>
import numpy as np
import jax
import jax.numpy as jnp
from jax import lax
from jax.experimental import pallas as pl
from jax.experimental.pallas import tpu as pltpu


# ----------------------------------------------------------------------------
# Pallas kernel factory
# ----------------------------------------------------------------------------
def _make_shuffle_unit_kernel(*, downsample, H, W, nb, out_eff):
    P = H * W
    L = nb * P                       # lane extent of the full-resolution slab

    def kernel(*refs):
        if downsample:
            (x_ref, w1_ref, b1_ref, tapw_ref, mask_ref, b2_ref, w3_ref,
             b3_ref, ssub_ref, pool_ref, out_ref) = refs
        else:
            (x_ref, w1_ref, b1_ref, tapw_ref, mask_ref, b2_ref, w3_ref,
             b3_ref, out_ref) = refs

        x = x_ref[0]                                        # (Cin, L)

        # compress 1x1 grouped conv (+shuffle, +BN1 scale folded) + bias + ReLU
        y = jnp.dot(w1_ref[...], x, preferred_element_type=jnp.float32)
        y = jnp.maximum(y + b1_ref[...], 0.0)               # (mid, L)

        # depthwise 3x3 conv (pad=1) via 8 lane rolls + centre tap.
        # per tap:  (roll(y) * spatial_mask[1,L]) * channel_weight[mid,1]
        # mask is tiled per image, so cross-image roll wraparound is zeroed.
        acc = y * tapw_ref[4]                               # centre: mask == 1
        for k in range(9):
            if k == 4:
                continue
            oy, ox = k // 3 - 1, k % 3 - 1
            s = oy * W + ox
            t = pltpu.roll(y, (-s) % L, axis=1)
            acc = acc + (t * mask_ref[k]) * tapw_ref[k]     # (mid, L)

        if downsample:
            # stride-2: keep even (row, col) positions via one 0/1 matmul
            acc = jnp.dot(acc, ssub_ref[...],
                          preferred_element_type=jnp.float32)    # (mid, Lo)
        acc = acc + b2_ref[...]

        # expand 1x1 grouped conv (+BN3 scale folded) + bias
        z = jnp.dot(w3_ref[...], acc,
                    preferred_element_type=jnp.float32) + b3_ref[...]

        if downsample:
            # identity avg-pool(3x3, s2, p1, count_include_pad) + subsample
            # fused into ONE pooling-matrix matmul (MXU has slack here).
            pool = jnp.dot(x, pool_ref[...],
                           preferred_element_type=jnp.float32)   # (Cin, Lo)
            out_ref[0, :out_eff, :] = jnp.maximum(z, 0.0)
            out_ref[0, out_eff:, :] = jnp.maximum(pool, 0.0)
        else:
            out_ref[0] = jnp.maximum(z + x, 0.0)

    return kernel


# ----------------------------------------------------------------------------
# Host-side parameter massaging
# ----------------------------------------------------------------------------
def grouped_1x1_dense(w, groups):
    """(Cout, Cin/groups, 1, 1) grouped 1x1 conv weight -> dense (Cout, Cin)."""
    w = np.asarray(w, np.float32)[:, :, 0, 0]
    cout, cin_g = w.shape
    cout_g = cout // groups
    dense = np.zeros((cout, cin_g * groups), np.float32)
    for g in range(groups):
        dense[g * cout_g:(g + 1) * cout_g, g * cin_g:(g + 1) * cin_g] = \
            w[g * cout_g:(g + 1) * cout_g]
    return dense


def fold_bn(bn, eps=1e-5):
    g, b, m, v = (np.asarray(t, np.float32) for t in bn)
    scale = g / np.sqrt(v + eps)
    bias = b - m * scale
    return scale, bias


def _spatial_masks(H, W):
    """(9, H*W) in-bounds masks for the 3x3 taps (pad=1)."""
    P = H * W
    masks = np.zeros((9, P), np.float32)
    for k in range(9):
        oy, ox = k // 3 - 1, k % 3 - 1
        for i in range(H):
            if not (0 <= i + oy < H):
                continue
            for j in range(W):
                if 0 <= j + ox < W:
                    masks[k, i * W + j] = 1.0
    return masks


def _pick_block_n(N, P, Po, Cin, Cout, mid, downsample):
    """Largest per-step image count whose VMEM footprint stays small.

    Larger Nb -> lane-dense stores (Nb*Po >= 128) and fewer, wider matmuls;
    the byte cap keeps double-buffered I/O plus the block-diagonal
    subsample/pool constants well under the v7x 32 MiB default scoped VMEM.
    For large N this also leaves N//Nb >= several grid steps so both v7x
    TensorCores get parallel work.
    """
    best = 1
    for nb in range(1, min(N, 8) + 1):
        if N % nb:
            continue
        bytes_ = 2 * 4 * nb * (Cin * P + Cout * Po)          # dbl-buffered I/O
        bytes_ += 4 * (mid * Cin + Cout * mid + 9 * (mid + nb * P))
        if downsample:
            bytes_ += 2 * 4 * (nb * P) * (nb * Po)           # ssub + pool
        if bytes_ <= 24 * 1024 * 1024:
            best = nb
    return best


def init_params(key, in_channels, out_channels, groups, downsample, ignore_group):
    mid = out_channels // 4
    out_eff = out_channels - in_channels if downsample else out_channels
    g1 = 1 if ignore_group else groups
    ks = jax.random.split(key, 12)
    w1 = 0.1 * jax.random.normal(ks[0], (mid, in_channels // g1, 1, 1), jnp.float32)
    wdw = 0.1 * jax.random.normal(ks[1], (mid, 1, 3, 3), jnp.float32)
    w3 = 0.1 * jax.random.normal(ks[2], (out_eff, mid // groups, 1, 1), jnp.float32)

    def bn(kk, c):
        g = 1.0 + 0.1 * jax.random.normal(kk[0], (c,), jnp.float32)
        b = 0.1 * jax.random.normal(kk[1], (c,), jnp.float32)
        m = 0.05 * jax.random.normal(kk[2], (c,), jnp.float32)
        v = jnp.abs(jax.random.normal(kk[3], (c,), jnp.float32)) + 0.5
        return (g, b, m, v)

    return dict(w1=w1, wdw=wdw, w3=w3,
                bn1=bn(ks[3:7], mid),
                bn2=bn(ks[7:11], mid),
                bn3=bn(jax.random.split(ks[11], 4), out_eff))


# ----------------------------------------------------------------------------
# pallas_call wrapper
# ----------------------------------------------------------------------------
def shuffle_unit_forward(x_nchw, params, cfg):
    N, Cin, H, W = x_nchw.shape
    groups = cfg["groups"]
    downsample = cfg["downsample"]
    ignore_group = cfg["ignore_group"]
    out_channels = cfg["out_channels"]
    mid = out_channels // 4
    out_eff = out_channels - Cin if downsample else out_channels
    g1 = 1 if ignore_group else groups
    stride = 2 if downsample else 1

    if not downsample:
        assert out_eff == Cin, "residual add requires out_channels == in_channels"
    else:
        # the two sublane-sliced output stores assume 8-aligned channel splits
        assert out_eff % 8 == 0 and Cin % 8 == 0, \
            "downsample path assumes 8-aligned channel counts"

    P = H * W
    Ho = (H + 2 - 3) // stride + 1
    Wo = (W + 2 - 3) // stride + 1
    Po = Ho * Wo
    Cout = out_eff + Cin if downsample else out_eff

    # ---- fold BN into weights / biases, fold channel shuffle into conv1 ----
    s1, b1 = fold_bn(params["bn1"])
    s2, b2 = fold_bn(params["bn2"])
    s3, b3 = fold_bn(params["bn3"])

    cpg = mid // groups
    perm = np.array([(c % groups) * cpg + c // groups for c in range(mid)])

    w1_dense = grouped_1x1_dense(params["w1"], g1)               # (mid, Cin)
    w1f = (s1[:, None] * w1_dense)[perm].astype(np.float32)      # shuffle + BN1
    b1f = b1[perm][:, None].astype(np.float32)                   # (mid, 1)

    wdw = np.asarray(params["wdw"], np.float32)[:, 0]            # (mid, 3, 3)
    tapw = (np.transpose(wdw, (1, 2, 0)).reshape(9, mid)
            * s2[None, :])[:, :, None].astype(np.float32)        # (9, mid, 1)
    b2f = b2[:, None].astype(np.float32)                         # (mid, 1)

    w3_dense = grouped_1x1_dense(params["w3"], groups)           # (out_eff, mid)
    w3f = (s3[:, None] * w3_dense).astype(np.float32)
    b3f = b3[:, None].astype(np.float32)                         # (out_eff, 1)

    masks = _spatial_masks(H, W)                                 # (9, P)

    # ---- lane-axis batching: Nb images per grid step ----
    Nb = _pick_block_n(N, P, Po, Cin, Cout, mid, downsample)
    G = N // Nb
    L, Lo = Nb * P, Nb * Po

    # masks tiled per image so roll wraparound never leaks across images
    mask_t = np.tile(masks[:, None, :], (1, 1, Nb)).astype(np.float32)  # (9,1,L)

    # layout plumbing (pure XLA, outside the kernel): NCHW -> (G, Cin, Nb*P)
    x_slab = (jnp.reshape(x_nchw, (G, Nb, Cin, P))
              .transpose(0, 2, 1, 3)
              .reshape(G, Cin, L))

    def const_spec(shape):
        nd = len(shape)
        return pl.BlockSpec(shape, lambda g, _nd=nd: (0,) * _nd)

    in_specs = [
        pl.BlockSpec((1, Cin, L), lambda g: (g, 0, 0)),
        const_spec((mid, Cin)),
        const_spec((mid, 1)),
        const_spec((9, mid, 1)),
        const_spec((9, 1, L)),
        const_spec((mid, 1)),
        const_spec((out_eff, mid)),
        const_spec((out_eff, 1)),
    ]
    args = [x_slab, jnp.asarray(w1f), jnp.asarray(b1f), jnp.asarray(tapw),
            jnp.asarray(mask_t), jnp.asarray(b2f), jnp.asarray(w3f),
            jnp.asarray(b3f)]

    if downsample:
        # single-image stride-2 subsample and avg-pool(+subsample) matrices
        ssub_s = np.zeros((P, Po), np.float32)
        pool_s = np.zeros((P, Po), np.float32)
        for io in range(Ho):
            for jo in range(Wo):
                ssub_s[(2 * io) * W + 2 * jo, io * Wo + jo] = 1.0
                for oy in (-1, 0, 1):
                    for ox in (-1, 0, 1):
                        i, j = 2 * io + oy, 2 * jo + ox
                        if 0 <= i < H and 0 <= j < W:
                            pool_s[i * W + j, io * Wo + jo] = 1.0 / 9.0
        # block-diagonal over the Nb images in the lane slab
        ssub = np.zeros((L, Lo), np.float32)
        pool_m = np.zeros((L, Lo), np.float32)
        for n in range(Nb):
            ssub[n * P:(n + 1) * P, n * Po:(n + 1) * Po] = ssub_s
            pool_m[n * P:(n + 1) * P, n * Po:(n + 1) * Po] = pool_s
        in_specs += [const_spec((L, Lo)), const_spec((L, Lo))]
        args += [jnp.asarray(ssub), jnp.asarray(pool_m)]

    kernel = _make_shuffle_unit_kernel(downsample=downsample, H=H, W=W,
                                       nb=Nb, out_eff=out_eff)

    out = pl.pallas_call(
        kernel,
        out_shape=jax.ShapeDtypeStruct((G, Cout, Lo), jnp.float32),
        grid=(G,),
        in_specs=in_specs,
        out_specs=pl.BlockSpec((1, Cout, Lo), lambda g: (g, 0, 0)),
        compiler_params=pltpu.CompilerParams(
            dimension_semantics=("parallel",)),
    )(*args)

    # (G, Cout, Nb*Po) lane slab -> NCHW
    out = (out.reshape(G, Cout, Nb, Po)
              .transpose(0, 2, 1, 3)
              .reshape(N, Cout, Ho, Wo))
    return out


# ----------------------------------------------------------------------------
# Pure-JAX reference (mirrors the PyTorch forward, eval-mode BN).
# ----------------------------------------------------------------------------
def shuffle_unit_reference(x, params, cfg):
    groups = cfg["groups"]
    downsample = cfg["downsample"]
    ignore_group = cfg["ignore_group"]
    Cin = x.shape[1]
    out_channels = cfg["out_channels"]
    mid = out_channels // 4
    g1 = 1 if ignore_group else groups
    stride = 2 if downsample else 1
    eps = 1e-5
    dn = ("NCHW", "OIHW", "NCHW")
    hp = lax.Precision.HIGHEST

    def bn_apply(y, bn):
        g, b, m, v = (t[None, :, None, None] for t in bn)
        return (y - m) / jnp.sqrt(v + eps) * g + b

    identity = x
    y = lax.conv_general_dilated(x, params["w1"], (1, 1), "VALID",
                                 feature_group_count=g1,
                                 dimension_numbers=dn, precision=hp)
    y = jnp.maximum(bn_apply(y, params["bn1"]), 0.0)
    N, C, H, W = y.shape
    y = y.reshape(N, groups, C // groups, H, W).transpose(0, 2, 1, 3, 4).reshape(N, C, H, W)
    y = lax.conv_general_dilated(y, params["wdw"], (stride, stride),
                                 ((1, 1), (1, 1)), feature_group_count=mid,
                                 dimension_numbers=dn, precision=hp)
    y = bn_apply(y, params["bn2"])
    y = lax.conv_general_dilated(y, params["w3"], (1, 1), "VALID",
                                 feature_group_count=groups,
                                 dimension_numbers=dn, precision=hp)
    y = bn_apply(y, params["bn3"])
    if downsample:
        pooled = lax.reduce_window(identity, 0.0, lax.add, (1, 1, 3, 3),
                                   (1, 1, 2, 2),
                                   ((0, 0), (0, 0), (1, 1), (1, 1))) / 9.0
        y = jnp.concatenate([y, pooled], axis=1)
    else:
        y = y + identity
    return jnp.maximum(y, 0.0)


if __name__ == "__main__":
    key = jax.random.PRNGKey(0)
    configs = [
        dict(in_channels=16, out_channels=16, groups=2,
             downsample=False, ignore_group=False),
        dict(in_channels=16, out_channels=32, groups=2,
             downsample=True, ignore_group=True),
    ]
    N, H, W = 2, 16, 16
    for i, cfg in enumerate(configs):
        kx, kp = jax.random.split(jax.random.fold_in(key, i))
        x = jax.random.normal(kx, (N, cfg["in_channels"], H, W), jnp.float32)
        params = init_params(kp, cfg["in_channels"], cfg["out_channels"],
                             cfg["groups"], cfg["downsample"], cfg["ignore_group"])
        out = shuffle_unit_forward(x, params, cfg)
        out = jax.block_until_ready(out)
        ref = shuffle_unit_reference(x, params, cfg)
        assert out.shape == ref.shape, (out.shape, ref.shape)
        assert np.allclose(np.asarray(out), np.asarray(ref),
                           atol=5e-3, rtol=5e-3), f"mismatch in config {i}"
    print("KERNEL_OK")
</pallas_src>

<mosaic_0001>
module attributes {stable_mosaic.version = 11 : i64} {
  func.func @kernel(%arg0: i32, %arg1: memref<1x16x512xf32, #tpu.memory_space<vmem>>, %arg2: memref<4x16xf32, #tpu.memory_space<vmem>>, %arg3: memref<4x1xf32, #tpu.memory_space<vmem>>, %arg4: memref<9x4x1xf32, #tpu.memory_space<vmem>>, %arg5: memref<9x1x512xf32, #tpu.memory_space<vmem>>, %arg6: memref<4x1xf32, #tpu.memory_space<vmem>>, %arg7: memref<16x4xf32, #tpu.memory_space<vmem>>, %arg8: memref<16x1xf32, #tpu.memory_space<vmem>>, %arg9: memref<1x16x512xf32, #tpu.memory_space<vmem>>) attributes {dimension_semantics = [#tpu.dimension_semantics<parallel>], iteration_bounds = array<i64: 1>, scalar_prefetch = 0 : i64, scratch_operands = 0 : i64, tpu.core_type = #tpu.core_type<tc>, window_params = [{transform_indices = @transform_0, window_bounds = array<i64: 1, 16, 512>}, {pipeline_mode = #tpu.pipeline_mode<synchronous>, transform_indices = @transform_1, window_bounds = array<i64: 4, 16>}, {pipeline_mode = #tpu.pipeline_mode<synchronous>, transform_indices = @transform_2, window_bounds = array<i64: 4, 1>}, {pipeline_mode = #tpu.pipeline_mode<synchronous>, transform_indices = @transform_3, window_bounds = array<i64: 9, 4, 1>}, {pipeline_mode = #tpu.pipeline_mode<synchronous>, transform_indices = @transform_4, window_bounds = array<i64: 9, 1, 512>}, {pipeline_mode = #tpu.pipeline_mode<synchronous>, transform_indices = @transform_5, window_bounds = array<i64: 4, 1>}, {pipeline_mode = #tpu.pipeline_mode<synchronous>, transform_indices = @transform_6, window_bounds = array<i64: 16, 4>}, {pipeline_mode = #tpu.pipeline_mode<synchronous>, transform_indices = @transform_7, window_bounds = array<i64: 16, 1>}, {transform_indices = @transform_8, window_bounds = array<i64: 1, 16, 512>}]} {
    %c0 = arith.constant 0 : index
    %c0_0 = arith.constant 0 : index
    %c0_1 = arith.constant 0 : index
    %0 = vector.load %arg1[%c0, %c0_0, %c0_1] : memref<1x16x512xf32, #tpu.memory_space<vmem>>, vector<1x16x512xf32>
    %1 = vector.shape_cast %0 : vector<1x16x512xf32> to vector<16x512xf32>
    %c0_2 = arith.constant 0 : index
    %c0_3 = arith.constant 0 : index
    %2 = vector.load %arg2[%c0_2, %c0_3] : memref<4x16xf32, #tpu.memory_space<vmem>>, vector<4x16xf32>
    %cst = arith.constant dense<0.000000e+00> : vector<4x512xf32>
    %3 = tpu.matmul %2, %1, %cst {dimension_numbers = #tpu.dot_dimension_numbers<[1], [0], [0], [1], [0, 0, 1, 1], [], []>} : vector<4x16xf32>, vector<16x512xf32>, vector<4x512xf32> -> vector<4x512xf32>
    %c0_4 = arith.constant 0 : index
    %c0_5 = arith.constant 0 : index
    %4 = vector.load %arg3[%c0_4, %c0_5] : memref<4x1xf32, #tpu.memory_space<vmem>>, vector<4x1xf32>
    %5 = vector.broadcast %4 : vector<4x1xf32> to vector<4x512xf32>
    %6 = arith.addf %3, %5 : vector<4x512xf32>
    %cst_6 = arith.constant 0.000000e+00 : f32
    %7 = vector.broadcast %cst_6 : f32 to vector<4x512xf32>
    %8 = arith.maximumf %6, %7 : vector<4x512xf32>
    %c4 = arith.constant 4 : index
    %c0_7 = arith.constant 0 : index
    %c0_8 = arith.constant 0 : index
    %9 = vector.load %arg4[%c4, %c0_7, %c0_8] : memref<9x4x1xf32, #tpu.memory_space<vmem>>, vector<1x4x1xf32>
    %10 = vector.shape_cast %9 : vector<1x4x1xf32> to vector<4x1xf32>
    %11 = vector.broadcast %10 : vector<4x1xf32> to vector<4x512xf32>
    %12 = arith.mulf %8, %11 : vector<4x512xf32>
    %c17_i32 = arith.constant 17 : i32
    %13 = tpu.dynamic_rotate %8 by %c17_i32 dim 1 : vector<4x512xf32>, i32 -> vector<4x512xf32>
    %c0_9 = arith.constant 0 : index
    %c0_10 = arith.constant 0 : index
    %c0_11 = arith.constant 0 : index
    %14 = vector.load %arg5[%c0_9, %c0_10, %c0_11] : memref<9x1x512xf32, #tpu.memory_space<vmem>>, vector<1x1x512xf32>
    %15 = vector.shape_cast %14 : vector<1x1x512xf32> to vector<1x512xf32>
    %16 = vector.broadcast %15 : vector<1x512xf32> to vector<4x512xf32>
    %17 = arith.mulf %13, %16 : vector<4x512xf32>
    %c0_12 = arith.constant 0 : index
    %c0_13 = arith.constant 0 : index
    %c0_14 = arith.constant 0 : index
    %18 = vector.load %arg4[%c0_12, %c0_13, %c0_14] : memref<9x4x1xf32, #tpu.memory_space<vmem>>, vector<1x4x1xf32>
    %19 = vector.shape_cast %18 : vector<1x4x1xf32> to vector<4x1xf32>
    %20 = vector.broadcast %19 : vector<4x1xf32> to vector<4x512xf32>
    %21 = arith.mulf %17, %20 : vector<4x512xf32>
    %22 = arith.addf %12, %21 : vector<4x512xf32>
    %c16_i32 = arith.constant 16 : i32
    %23 = tpu.dynamic_rotate %8 by %c16_i32 dim 1 : vector<4x512xf32>, i32 -> vector<4x512xf32>
    %c1 = arith.constant 1 : index
    %c0_15 = arith.constant 0 : index
    %c0_16 = arith.constant 0 : index
    %24 = vector.load %arg5[%c1, %c0_15, %c0_16] : memref<9x1x512xf32, #tpu.memory_space<vmem>>, vector<1x1x512xf32>
    %25 = vector.shape_cast %24 : vector<1x1x512xf32> to vector<1x512xf32>
    %26 = vector.broadcast %25 : vector<1x512xf32> to vector<4x512xf32>
    %27 = arith.mulf %23, %26 : vector<4x512xf32>
    %c1_17 = arith.constant 1 : index
    %c0_18 = arith.constant 0 : index
    %c0_19 = arith.constant 0 : index
    %28 = vector.load %arg4[%c1_17, %c0_18, %c0_19] : memref<9x4x1xf32, #tpu.memory_space<vmem>>, vector<1x4x1xf32>
    %29 = vector.shape_cast %28 : vector<1x4x1xf32> to vector<4x1xf32>
    %30 = vector.broadcast %29 : vector<4x1xf32> to vector<4x512xf32>
    %31 = arith.mulf %27, %30 : vector<4x512xf32>
    %32 = arith.addf %22, %31 : vector<4x512xf32>
    %c15_i32 = arith.constant 15 : i32
    %33 = tpu.dynamic_rotate %8 by %c15_i32 dim 1 : vector<4x512xf32>, i32 -> vector<4x512xf32>
    %c2 = arith.constant 2 : index
    %c0_20 = arith.constant 0 : index
    %c0_21 = arith.constant 0 : index
    %34 = vector.load %arg5[%c2, %c0_20, %c0_21] : memref<9x1x512xf32, #tpu.memory_space<vmem>>, vector<1x1x512xf32>
    %35 = vector.shape_cast %34 : vector<1x1x512xf32> to vector<1x512xf32>
    %36 = vector.broadcast %35 : vector<1x512xf32> to vector<4x512xf32>
    %37 = arith.mulf %33, %36 : vector<4x512xf32>
    %c2_22 = arith.constant 2 : index
    %c0_23 = arith.constant 0 : index
    %c0_24 = arith.constant 0 : index
    %38 = vector.load %arg4[%c2_22, %c0_23, %c0_24] : memref<9x4x1xf32, #tpu.memory_space<vmem>>, vector<1x4x1xf32>
    %39 = vector.shape_cast %38 : vector<1x4x1xf32> to vector<4x1xf32>
    %40 = vector.broadcast %39 : vector<4x1xf32> to vector<4x512xf32>
    %41 = arith.mulf %37, %40 : vector<4x512xf32>
    %42 = arith.addf %32, %41 : vector<4x512xf32>
    %c1_i32 = arith.constant 1 : i32
    %43 = tpu.dynamic_rotate %8 by %c1_i32 dim 1 : vector<4x512xf32>, i32 -> vector<4x512xf32>
    %c3 = arith.constant 3 : index
    %c0_25 = arith.constant 0 : index
    %c0_26 = arith.constant 0 : index
    %44 = vector.load %arg5[%c3, %c0_25, %c0_26] : memref<9x1x512xf32, #tpu.memory_space<vmem>>, vector<1x1x512xf32>
    %45 = vector.shape_cast %44 : vector<1x1x512xf32> to vector<1x512xf32>
    %46 = vector.broadcast %45 : vector<1x512xf32> to vector<4x512xf32>
    %47 = arith.mulf %43, %46 : vector<4x512xf32>
    %c3_27 = arith.constant 3 : index
    %c0_28 = arith.constant 0 : index
    %c0_29 = arith.constant 0 : index
    %48 = vector.load %arg4[%c3_27, %c0_28, %c0_29] : memref<9x4x1xf32, #tpu.memory_space<vmem>>, vector<1x4x1xf32>
    %49 = vector.shape_cast %48 : vector<1x4x1xf32> to vector<4x1xf32>
    %50 = vector.broadcast %49 : vector<4x1xf32> to vector<4x512xf32>
    %51 = arith.mulf %47, %50 : vector<4x512xf32>
    %52 = arith.addf %42, %51 : vector<4x512xf32>
    %c511_i32 = arith.constant 511 : i32
    %53 = tpu.dynamic_rotate %8 by %c511_i32 dim 1 : vector<4x512xf32>, i32 -> vector<4x512xf32>
    %c5 = arith.constant 5 : index
    %c0_30 = arith.constant 0 : index
    %c0_31 = arith.constant 0 : index
    %54 = vector.load %arg5[%c5, %c0_30, %c0_31] : memref<9x1x512xf32, #tpu.memory_space<vmem>>, vector<1x1x512xf32>
    %55 = vector.shape_cast %54 : vector<1x1x512xf32> to vector<1x512xf32>
    %56 = vector.broadcast %55 : vector<1x512xf32> to vector<4x512xf32>
    %57 = arith.mulf %53, %56 : vector<4x512xf32>
    %c5_32 = arith.constant 5 : index
    %c0_33 = arith.constant 0 : index
    %c0_34 = arith.constant 0 : index
    %58 = vector.load %arg4[%c5_32, %c0_33, %c0_34] : memref<9x4x1xf32, #tpu.memory_space<vmem>>, vector<1x4x1xf32>
    %59 = vector.shape_cast %58 : vector<1x4x1xf32> to vector<4x1xf32>
    %60 = vector.broadcast %59 : vector<4x1xf32> to vector<4x512xf32>
    %61 = arith.mulf %57, %60 : vector<4x512xf32>
    %62 = arith.addf %52, %61 : vector<4x512xf32>
    %c497_i32 = arith.constant 497 : i32
    %63 = tpu.dynamic_rotate %8 by %c497_i32 dim 1 : vector<4x512xf32>, i32 -> vector<4x512xf32>
    %c6 = arith.constant 6 : index
    %c0_35 = arith.constant 0 : index
    %c0_36 = arith.constant 0 : index
    %64 = vector.load %arg5[%c6, %c0_35, %c0_36] : memref<9x1x512xf32, #tpu.memory_space<vmem>>, vector<1x1x512xf32>
    %65 = vector.shape_cast %64 : vector<1x1x512xf32> to vector<1x512xf32>
    %66 = vector.broadcast %65 : vector<1x512xf32> to vector<4x512xf32>
    %67 = arith.mulf %63, %66 : vector<4x512xf32>
    %c6_37 = arith.constant 6 : index
    %c0_38 = arith.constant 0 : index
    %c0_39 = arith.constant 0 : index
    %68 = vector.load %arg4[%c6_37, %c0_38, %c0_39] : memref<9x4x1xf32, #tpu.memory_space<vmem>>, vector<1x4x1xf32>
    %69 = vector.shape_cast %68 : vector<1x4x1xf32> to vector<4x1xf32>
    %70 = vector.broadcast %69 : vector<4x1xf32> to vector<4x512xf32>
    %71 = arith.mulf %67, %70 : vector<4x512xf32>
    %72 = arith.addf %62, %71 : vector<4x512xf32>
    %c496_i32 = arith.constant 496 : i32
    %73 = tpu.dynamic_rotate %8 by %c496_i32 dim 1 : vector<4x512xf32>, i32 -> vector<4x512xf32>
    %c7 = arith.constant 7 : index
    %c0_40 = arith.constant 0 : index
    %c0_41 = arith.constant 0 : index
    %74 = vector.load %arg5[%c7, %c0_40, %c0_41] : memref<9x1x512xf32, #tpu.memory_space<vmem>>, vector<1x1x512xf32>
    %75 = vector.shape_cast %74 : vector<1x1x512xf32> to vector<1x512xf32>
    %76 = vector.broadcast %75 : vector<1x512xf32> to vector<4x512xf32>
    %77 = arith.mulf %73, %76 : vector<4x512xf32>
    %c7_42 = arith.constant 7 : index
    %c0_43 = arith.constant 0 : index
    %c0_44 = arith.constant 0 : index
    %78 = vector.load %arg4[%c7_42, %c0_43, %c0_44] : memref<9x4x1xf32, #tpu.memory_space<vmem>>, vector<1x4x1xf32>
    %79 = vector.shape_cast %78 : vector<1x4x1xf32> to vector<4x1xf32>
    %80 = vector.broadcast %79 : vector<4x1xf32> to vector<4x512xf32>
    %81 = arith.mulf %77, %80 : vector<4x512xf32>
    %82 = arith.addf %72, %81 : vector<4x512xf32>
    %c495_i32 = arith.constant 495 : i32
    %83 = tpu.dynamic_rotate %8 by %c495_i32 dim 1 : vector<4x512xf32>, i32 -> vector<4x512xf32>
    %c8 = arith.constant 8 : index
    %c0_45 = arith.constant 0 : index
    %c0_46 = arith.constant 0 : index
    %84 = vector.load %arg5[%c8, %c0_45, %c0_46] : memref<9x1x512xf32, #tpu.memory_space<vmem>>, vector<1x1x512xf32>
    %85 = vector.shape_cast %84 : vector<1x1x512xf32> to vector<1x512xf32>
    %86 = vector.broadcast %85 : vector<1x512xf32> to vector<4x512xf32>
    %87 = arith.mulf %83, %86 : vector<4x512xf32>
    %c8_47 = arith.constant 8 : index
    %c0_48 = arith.constant 0 : index
    %c0_49 = arith.constant 0 : index
    %88 = vector.load %arg4[%c8_47, %c0_48, %c0_49] : memref<9x4x1xf32, #tpu.memory_space<vmem>>, vector<1x4x1xf32>
    %89 = vector.shape_cast %88 : vector<1x4x1xf32> to vector<4x1xf32>
    %90 = vector.broadcast %89 : vector<4x1xf32> to vector<4x512xf32>
    %91 = arith.mulf %87, %90 : vector<4x512xf32>
    %92 = arith.addf %82, %91 : vector<4x512xf32>
    %c0_50 = arith.constant 0 : index
    %c0_51 = arith.constant 0 : index
    %93 = vector.load %arg6[%c0_50, %c0_51] : memref<4x1xf32, #tpu.memory_space<vmem>>, vector<4x1xf32>
    %94 = vector.broadcast %93 : vector<4x1xf32> to vector<4x512xf32>
    %95 = arith.addf %92, %94 : vector<4x512xf32>
    %c0_52 = arith.constant 0 : index
    %c0_53 = arith.constant 0 : index
    %96 = vector.load %arg7[%c0_52, %c0_53] : memref<16x4xf32, #tpu.memory_space<vmem>>, vector<16x4xf32>
    %cst_54 = arith.constant dense<0.000000e+00> : vector<16x512xf32>
    %97 = tpu.matmul %96, %95, %cst_54 {dimension_numbers = #tpu.dot_dimension_numbers<[1], [0], [0], [1], [0, 0, 1, 1], [], []>} : vector<16x4xf32>, vector<4x512xf32>, vector<16x512xf32> -> vector<16x512xf32>
    %c0_55 = arith.constant 0 : index
    %c0_56 = arith.constant 0 : index
    %98 = vector.load %arg8[%c0_55, %c0_56] : memref<16x1xf32, #tpu.memory_space<vmem>>, vector<16x1xf32>
    %99 = vector.broadcast %98 : vector<16x1xf32> to vector<16x512xf32>
    %100 = arith.addf %97, %99 : vector<16x512xf32>
    %101 = arith.addf %100, %1 : vector<16x512xf32>
    %cst_57 = arith.constant 0.000000e+00 : f32
    %102 = vector.broadcast %cst_57 : f32 to vector<16x512xf32>
    %103 = arith.maximumf %101, %102 : vector<16x512xf32>
    %c0_58 = arith.constant 0 : index
    %c0_59 = arith.constant 0 : index
    %c0_60 = arith.constant 0 : index
    %104 = vector.load %arg9[%c0_58, %c0_59, %c0_60] : memref<1x16x512xf32, #tpu.memory_space<vmem>>, vector<1x16x512xf32>
    %105 = vector.shape_cast %104 : vector<1x16x512xf32> to vector<16x512xf32>
    %106 = vector.shape_cast %103 : vector<16x512xf32> to vector<1x16x512xf32>
    tpu.vector_store %arg9[%c0_58, %c0_59, %c0_60], %106 {strides = array<i32>} : memref<1x16x512xf32, #tpu.memory_space<vmem>>, vector<1x16x512xf32>,
    return
  }
  func.func @transform_0(%arg0: i32) -> (i32, i32, i32) {
    %c0_i32 = arith.constant 0 : i32
    %c0_i32_0 = arith.constant 0 : i32
    %c0_i32_1 = arith.constant 0 : i32
    return %arg0, %c0_i32, %c0_i32_0 : i32, i32, i32
  }
  func.func @transform_1(%arg0: i32) -> (i32, i32) {
    %c0_i32 = arith.constant 0 : i32
    %c0_i32_0 = arith.constant 0 : i32
    %c0_i32_1 = arith.constant 0 : i32
    return %c0_i32, %c0_i32_0 : i32, i32
  }
  func.func @transform_2(%arg0: i32) -> (i32, i32) {
    %c0_i32 = arith.constant 0 : i32
    %c0_i32_0 = arith.constant 0 : i32
    %c0_i32_1 = arith.constant 0 : i32
    return %c0_i32, %c0_i32_0 : i32, i32
  }
  func.func @transform_3(%arg0: i32) -> (i32, i32, i32) {
    %c0_i32 = arith.constant 0 : i32
    %c0_i32_0 = arith.constant 0 : i32
    %c0_i32_1 = arith.constant 0 : i32
    %c0_i32_2 = arith.constant 0 : i32
    return %c0_i32, %c0_i32_0, %c0_i32_1 : i32, i32, i32
  }
  func.func @transform_4(%arg0: i32) -> (i32, i32, i32) {
    %c0_i32 = arith.constant 0 : i32
    %c0_i32_0 = arith.constant 0 : i32
    %c0_i32_1 = arith.constant 0 : i32
    %c0_i32_2 = arith.constant 0 : i32
    return %c0_i32, %c0_i32_0, %c0_i32_1 : i32, i32, i32
  }
  func.func @transform_5(%arg0: i32) -> (i32, i32) {
    %c0_i32 = arith.constant 0 : i32
    %c0_i32_0 = arith.constant 0 : i32
    %c0_i32_1 = arith.constant 0 : i32
    return %c0_i32, %c0_i32_0 : i32, i32
  }
  func.func @transform_6(%arg0: i32) -> (i32, i32) {
    %c0_i32 = arith.constant 0 : i32
    %c0_i32_0 = arith.constant 0 : i32
    %c0_i32_1 = arith.constant 0 : i32
    return %c0_i32, %c0_i32_0 : i32, i32
  }
  func.func @transform_7(%arg0: i32) -> (i32, i32) {
    %c0_i32 = arith.constant 0 : i32
    %c0_i32_0 = arith.constant 0 : i32
    %c0_i32_1 = arith.constant 0 : i32
    return %c0_i32, %c0_i32_0 : i32, i32
  }
  func.func @transform_8(%arg0: i32) -> (i32, i32, i32) {
    %c0_i32 = arith.constant 0 : i32
    %c0_i32_0 = arith.constant 0 : i32
    %c0_i32_1 = arith.constant 0 : i32
    return %arg0, %c0_i32, %c0_i32_0 : i32, i32, i32
  }
}

</mosaic_0001>

<bundles_post_ra>
// kernel: tpu_custom_call.1
= control target key start
LH: loop header
LB: loop body
LE: loop exit
PB: predicated region body
PF: predicated region fallthrough
CT: control target
= control target key end

     0   :  { %13 = vsyncpa [#allocation3], 0  ;;  %s1254_s0 = inlined_call_operand.hbm [shape: f32[1,16,512], index: 0, kind: input, shape index: {}]   ;;  %s1255_s1 = inlined_call_operand.vmem [shape: f32[4,16], index: 1, kind: input, shape index: {}]   ;;  %s1256_s2 = inlined_call_operand.vmem [shape: f32[4,1], index: 2, kind: input, shape index: {}]   ;;  %s1257_s3 = inlined_call_operand.vmem [shape: f32[9,4,1], index: 3, kind: input, shape index: {}]   ;;  %s1258_s4 = inlined_call_operand.vmem [shape: f32[9,1,512], index: 4, kind: input, shape index: {}]   ;;  %s1259_s5 = inlined_call_operand.vmem [shape: f32[4,1], index: 5, kind: input, shape index: {}]   ;;  %s1260_s6 = inlined_call_operand.vmem [shape: f32[16,4], index: 6, kind: input, shape index: {}]   ;;  %s1261_s7 = inlined_call_operand.vmem [shape: f32[16,1], index: 7, kind: input, shape index: {}]   ;;  %s1262_s8 = inlined_call_operand.hbm [shape: f32[1,16,512], index: 8, kind: output, shape index: {}]  }
   0x1   :  { %14 = vsyncpa [#allocation4], 0  ;;  %s19_s29 = sshll.u32 %s1254_s0, 4  ;;  %s782_s30 = smov [#allocation2]   ;;  %s20_s29 = int_to_ptr.hbm [resolvable:$true] %s19_s29 }
   0x2   :  { %s21_s9 = sshll.u32 %s782_s30, 4  ;;  %s783_s10 = smov 512   ;;  %s22_s9 = int_to_ptr.vmem [resolvable:$true] %s21_s9 }
   0x3   :  { %s784_s11 = smov 32  }
   0x4   :  { %27 = dma.hbm_to_vmem [thread:$0]  %s20_s29, 1024, %s22_s9, [#allocation3], %s783_s10, %s783_s10, %s784_s11  }
   0x5   :  { %778 = dma.done.wait [#allocation3], 1024  }
   0x6   :  { %779 = vsyncadd [#allocation3], 4294966272  ;;  %v785_v0 = vmov 0   ;;  %v55_v1 = vld [vmem:[%s1256_s2] sm:$0xf]  ;;  %v851_v3 = vld [vmem:[#allocation2 + $0x28] sm:$0xff]  ;;  %v168_v46 = vlaneseq }
   0x7   :  { %727 = vset.pattern.permute.xlu0 %v785_v0  ;;  %728 = vset.pattern.permute.xlu1 %v785_v0  ;;  %v849_v2 = vld [vmem:[#allocation2 + $0x20] sm:$0xff]  ;;  %1267 = vst [vmem:[#allocation9_spill] sm:$0xff] %v851_v3  ;;  %v854_v4 = vld [vmem:[#allocation2 + $0x30] sm:$0xff]  ;;  %v856_v5 = vld [vmem:[#allocation2 + $0x38] sm:$0xff]  ;;  %vm61_vm0 = vcmask 130048   ;;  %s786_s9 = smov 17  }
   0x8   :  { %729 = vset.pattern.permute.xlu2 %v785_v0  ;;  %1266 = vst [vmem:[#allocation8_spill] sm:$0xff] %v849_v2  ;;  %58 = vperm.xlu0 %727, %v55_v1   ;;  %v858_v6 = vld [vmem:[#allocation2] sm:$0xff]  ;;  %v862_v7 = vld [vmem:[#allocation2 + $0x8] sm:$0xff]  ;;  %v864_v8 = vld [vmem:[#allocation2 + $0x10] sm:$0xff]  ;;  %s787_s12 = smov 16   ;;  %s789_s13 = smov 1  }
   0x9   :  { %79 = vmatpush.msra.mxu0 %v849_v2  ;;  %1268 = vst [vmem:[#allocation10_spill] sm:$0xff] %v856_v5  ;;  %99 = vmatpush.msra.mxu1 %v851_v3  ;;  %v866_v9 = vld [vmem:[#allocation2 + $0x18] sm:$0xff]  ;;  %v54_v10 = vld [vmem:[%s1255_s1] sm:$0xf]  ;;  %v687_v11 = vld [vmem:[%s1257_s3 + $0x10] sm:$0xf] }
   0xa   :  { %119 = vmatpush.msra.mxu2 %v854_v4  ;;  %139 = vmatpush.msra.mxu3 %v856_v5  ;;  %v189_v12 = vld [vmem:[%s1257_s3] sm:$0xf]  ;;  %v689_v13 = vld [vmem:[%s1257_s3 + $0x4] sm:$0xf]  ;;  %v693_v14 = vld [vmem:[%s1257_s3 + $0xc] sm:$0xf] }
   0xb   :  { %80 = vmatpush.msra.mxu0 %v858_v6  ;;  %100 = vmatpush.msra.mxu1 %v862_v7  ;;  %v695_v15 = vld [vmem:[%s1257_s3 + $0x14] sm:$0xf]  ;;  %v699_v16 = vld [vmem:[%s1257_s3 + $0x1c] sm:$0xf]  ;;  %v701_v17 = vld [vmem:[%s1257_s3 + $0x20] sm:$0xf] }
   0xc   :  { %120 = vmatpush.msra.mxu2 %v864_v8  ;;  %140 = vmatpush.msra.mxu3 %v866_v9  ;;  %v691_v18 = vld [vmem:[%s1257_s3 + $0x8] sm:$0xf]  ;;  %v697_v19 = vld [vmem:[%s1257_s3 + $0x18] sm:$0xf]  ;;  %s788_s3 = smov 127   ;;  %s790_s0 = smov 15  }
   0xd   :  { %683 = vmatmul.msk.f32.vlgmr.msra.gmra.mxu0 %vm61_vm0, %v54_v10  ;;  %684 = vmatmul.msk.f32.vlgmr.msra.gmra.mxu1 %vm61_vm0, %v54_v10  ;;  %s791_s2 = smov 111   ;;  %s792_s14 = smov 112   ;;  %v504_v37 = vld [vmem:[%s1259_s5] sm:$0xf]  ;;  %v517_v40 = vld [vmem:[%s1261_s7 + $0x8] sm:$0xff]  ;;  %v981_v50 = vand.u32 127, %v168_v46 }
   0xe   :  { %685 = vmatmul.msk.f32.vlgmr.msra.gmra.mxu2 %vm61_vm0, %v54_v10  ;;  %686 = vmatmul.msk.f32.vlgmr.msra.gmra.mxu3 %vm61_vm0, %v54_v10  ;;  %s793_s15 = smov 113   ;;  %v516_v39 = vld [vmem:[%s1261_s7] sm:$0xff]  ;;  %v1004_v63 = vld [vmem:[%s1258_s4 + $0x8] sm:$0xf]  ;;  %v1017_v10 = vld [vmem:[%s1258_s4 + $0xc] sm:$0xf] }
   0xf   :  { %153 = vperm.xlu1 %728, %v687_v11   ;;  %192 = vperm.xlu2 %729, %v189_v12   ;;  %v986_v51 = vld [vmem:[%s1258_s4] sm:$0xf]  ;;  %vm170_vm1 = vcmp.lt.s32.totalorder %v981_v50, 17  ;;  %v1009_v0 = vld [vmem:[%s1258_s4 + $0x4] sm:$0xf]  ;;  %vm254_vm2 = vcmp.lt.s32.totalorder %v981_v50, 15 }
  0x10   :  { %235 = vperm.xlu0 %727, %v689_v13   ;;  %v178_v52 = vperm.slane %v986_v51, 1  ;;  %v263_v11 = vperm.slane %v1004_v63, 1  ;;  %vm211_vm3 = vcmp.lt.s32.totalorder %v981_v50, 16  ;;  %v220_v12 = vperm.slane %v1009_v0, 1  ;;  %s670_s18 = sshll.u32 %s1262_s8, 4  ;;  %s671_s18 = int_to_ptr.hbm [resolvable:$true] %s670_s18 }
  0x11   :  { %vm297_vm4 = vcmp.lt.s32.totalorder %v981_v50, 1  ;;  %v177_v46 = vperm.slane %v986_v51, 0  ;;  %vm340_vm5 = vcmp.lt.s32.totalorder %v981_v50, 127  ;;  %vm383_vm6 = vcmp.lt.s32.totalorder %v981_v50, 113 }
  0x12   :  { %vm469_vm7 = vcmp.lt.s32.totalorder %v981_v50, 111  ;;  %vm426_vm8 = vcmp.lt.s32.totalorder %v981_v50, 112  ;;  %vm535_vm9 = vcmask 1043456   ;;  %vm528_vm10 = vcmask 31744  }
  0x17   :  { %321 = vperm.xlu1 %728, %v693_v14   ;;  %278 = vperm.xlu2 %729, %v691_v18  }
  0x18   :  { %364 = vperm.xlu0 %727, %v695_v15  }
  0x1f   :  { %450 = vperm.xlu1 %728, %v699_v16   ;;  %407 = vperm.xlu2 %729, %v697_v19   ;;  %v306_v16 = vperm.slane %v1017_v10, 1 }
  0x20   :  { %493 = vperm.xlu0 %727, %v701_v17  }
  0x69   :  { %v936_v35 = vpop.permute.xlu2 %192 }
  0x71   :  { %v942_v36 = vpop.permute.xlu2 %278 }
  0x79   :  { %v957_v38 = vpop.permute.xlu2 %407 }
  0x7a   :  { %v59_v20 = vpop.permute.xlu0 %58 }
  0x81   :  { %v903_v25 = vpop.permute.xlu1 %153 }
  0x82   :  { %v965_v41 = vpop.permute.xlu0 %235 }
  0x89   :  { %v969_v43 = vpop.permute.xlu1 %321 }
  0x8a   :  { %v82_v21 = vpop.f32.mrf.mxu0  ;;  %v102_v23 = vpop.f32.mrf.mxu1 }
  0x8b   :  { %v83_v22 = vadd.f32 %v82_v21, %v59_v20  ;;  %v103_v24 = vadd.f32 %v102_v23, %v59_v20  ;;  %v971_v44 = vpop.permute.xlu0 %364 }
  0x8d   :  { %v145_v26 = vmax.f32 %v83_v22, 0.0  ;;  %v905_v27 = vmax.f32 %v103_v24, 0.0 }
  0x8f   :  { %v908_v28 = vmul.f32 %v903_v25, %v145_v26  ;;  %160 = vrot.lane.b32.xlu1 %v145_v26, %s786_s9  ;;  %205 = vrot.lane.b32.xlu2 %v905_v27, %s787_s12  ;;  %v157_v58 = vmul.f32 %v903_v25, %v905_v27 }
  0x90   :  { %162 = vrot.lane.b32.xlu0 %v905_v27, %s786_s9 }
  0x91   :  { %v122_v29 = vpop.f32.mrf.mxu2  ;;  %v142_v32 = vpop.f32.mrf.mxu3 }
  0x92   :  { %v123_v30 = vadd.f32 %v122_v29, %v59_v20  ;;  %v143_v33 = vadd.f32 %v142_v32, %v59_v20  ;;  %v975_v47 = vpop.permute.xlu1 %450 }
  0x93   :  { %v977_v48 = vpop.permute.xlu0 %493 }
  0x94   :  { %v917_v31 = vmax.f32 %v123_v30, 0.0  ;;  %v923_v34 = vmax.f32 %v143_v33, 0.0 }
  0x97   :  { %332 = vrot.lane.b32.xlu1 %v145_v26, %s788_s3  ;;  %291 = vrot.lane.b32.xlu2 %v905_v27, %s789_s13 }
  0x98   :  { %248 = vrot.lane.b32.xlu0 %v905_v27, %s790_s0 }
  0x9f   :  { %289 = vrot.lane.b32.xlu1 %v145_v26, %s789_s13  ;;  %246 = vrot.lane.b32.xlu2 %v145_v26, %s790_s0 }
  0xa0   :  { %203 = vrot.lane.b32.xlu0 %v145_v26, %s787_s12 }
  0xa7   :  { %461 = vrot.lane.b32.xlu1 %v145_v26, %s791_s2  ;;  %418 = vrot.lane.b32.xlu2 %v145_v26, %s792_s14 }
  0xa8   :  { %375 = vrot.lane.b32.xlu0 %v145_v26, %s793_s15 }
  0xaf   :  { %164 = vrot.lane.b32.xlu1 %v917_v31, %s786_s9  ;;  %377 = vrot.lane.b32.xlu2 %v905_v27, %s793_s15 }
  0xb0   :  { %334 = vrot.lane.b32.xlu0 %v905_v27, %s788_s3 }
  0xb7   :  { %166 = vrot.lane.b32.xlu1 %v923_v34, %s786_s9  ;;  %207 = vrot.lane.b32.xlu2 %v917_v31, %s787_s12 }
  0xb8   :  { %209 = vrot.lane.b32.xlu0 %v923_v34, %s787_s12 }
  0xbf   :  { %250 = vrot.lane.b32.xlu1 %v917_v31, %s790_s0  ;;  %252 = vrot.lane.b32.xlu2 %v923_v34, %s790_s0 }
  0xc0   :  { %293 = vrot.lane.b32.xlu0 %v917_v31, %s789_s13 }
  0xc7   :  { %295 = vrot.lane.b32.xlu1 %v923_v34, %s789_s13  ;;  %336 = vrot.lane.b32.xlu2 %v917_v31, %s788_s3 }
  0xc8   :  { %338 = vrot.lane.b32.xlu0 %v923_v34, %s788_s3 }
  0xcf   :  { %379 = vrot.lane.b32.xlu1 %v917_v31, %s793_s15  ;;  %381 = vrot.lane.b32.xlu2 %v923_v34, %s793_s15 }
  0xd0   :  { %422 = vrot.lane.b32.xlu0 %v917_v31, %s792_s14 }
  0xd7   :  { %424 = vrot.lane.b32.xlu1 %v923_v34, %s792_s14  ;;  %465 = vrot.lane.b32.xlu2 %v917_v31, %s791_s2 }
  0xd8   :  { %467 = vrot.lane.b32.xlu0 %v923_v34, %s791_s2 }
  0xdf   :  { %420 = vrot.lane.b32.xlu1 %v905_v27, %s792_s14  ;;  %463 = vrot.lane.b32.xlu2 %v905_v27, %s791_s2 }
  0xe0   :  { %507 = vperm.xlu0 %727, %v504_v37  }
  0xe7   :  { %520 = vperm.xlu1 %728, %v516_v39   ;;  %525 = vperm.xlu2 %729, %v517_v40  }
  0xe9   :  { %v967_v42 = vpop.permute.xlu2 %205 }
  0xf1   :  { %v973_v45 = vpop.permute.xlu2 %291 }
  0xf9   :  { %v979_v49 = vpop.permute.xlu2 %246 }
 0x101   :  { %v161_v53 = vpop.permute.xlu1 %160  ;;  %v992_v57 = vpop.permute.xlu2 %418 }
 0x102   :  { %v163_v54 = vpop.permute.xlu0 %162 }
 0x103   :  { %v173_v55 = vsel %vm170_vm1, %v161_v53, %v163_v54 }
 0x104   :  { %v186_v56 = vmul.f32 %v178_v52, %v173_v55 }
 0x106   :  { %v196_v59 = vmul.f32 %v936_v35, %v186_v56 }
 0x108   :  { %v200_v60 = vadd.f32 %v196_v59, %v157_v58 }
 0x109   :  { %v997_v61 = vpop.permute.xlu1 %332  ;;  %v1012_v1 = vpop.permute.xlu2 %377 }
 0x10a   :  { %v999_v62 = vpop.permute.xlu0 %248 }
 0x10b   :  { %v257_v13 = vsel %vm254_vm2, %v979_v49, %v999_v62 }
 0x10c   :  { %v271_v19 = vmul.f32 %v263_v11, %v257_v13  ;;  %v219_v13 = vperm.slane %v1009_v0, 0 }
 0x10e   :  { %v282_v23 = vmul.f32 %v942_v36, %v271_v19 }
 0x111   :  { %v1027_v14 = vpop.permute.xlu1 %289  ;;  %v208_v26 = vpop.permute.xlu2 %207 }
 0x112   :  { %v204_v15 = vpop.permute.xlu0 %203  ;;  %v300_v18 = vsel %vm297_vm4, %v1027_v14, %v973_v45 }
 0x113   :  { %v214_v17 = vsel %vm211_vm3, %v204_v15, %v967_v42  ;;  %v314_v22 = vmul.f32 %v306_v16, %v300_v18  ;;  %v180_v16 = vperm.slane %v986_v51, 3  ;;  %v179_v18 = vperm.slane %v986_v51, 2 }
 0x114   :  { %v228_v20 = vmul.f32 %v220_v12, %v214_v17  ;;  %v1058_v12 = vld [vmem:[%s1258_s4 + $0x18] sm:$0xf]  ;;  %v221_v51 = vperm.slane %v1009_v0, 2 }
 0x115   :  { %v325_v30 = vmul.f32 %v969_v43, %v314_v22 }
 0x116   :  { %v239_v21 = vmul.f32 %v965_v41, %v228_v20 }
 0x118   :  { %v243_v24 = vadd.f32 %v239_v21, %v200_v60  ;;  %v158_v21 = vmul.f32 %v903_v25, %v917_v31 }
 0x119   :  { %v1039_v27 = vpop.permute.xlu1 %461  ;;  %v253_v40 = vpop.permute.xlu2 %252 }
 0x11a   :  { %v286_v29 = vadd.f32 %v282_v23, %v243_v24  ;;  %v1042_v32 = vpop.permute.xlu0 %375  ;;  %v262_v23 = vperm.slane %v1004_v63, 0  ;;  %v159_v24 = vmul.f32 %v903_v25, %v923_v34 }
 0x11c   :  { %v1044_v33 = vadd.f32 %v325_v30, %v286_v29  ;;  %v258_v29 = vsel %vm254_vm2, %v253_v40, %v979_v49  ;;  %v264_v49 = vperm.slane %v1004_v63, 2 }
 0x121   :  { %v165_v37 = vpop.permute.xlu1 %164  ;;  %v1051_v59 = vpop.permute.xlu2 %336 }
 0x122   :  { %v1046_v39 = vpop.permute.xlu0 %334  ;;  %v172_v22 = vsel %vm170_vm1, %v163_v54, %v165_v37 }
 0x129   :  { %v167_v52 = vpop.permute.xlu1 %166  ;;  %v382_v25 = vpop.permute.xlu2 %381 }
 0x12a   :  { %v210_v55 = vpop.permute.xlu0 %209  ;;  %v174_v56 = vsel %vm170_vm1, %v167_v52, %v161_v53  ;;  %v171_v19 = vsel %vm170_vm1, %v165_v37, %v167_v52  ;;  %v187_v37 = vmul.f32 %v179_v18, %v172_v22  ;;  %v222_v52 = vperm.slane %v1009_v0, 3 }
 0x12b   :  { %v185_v58 = vmul.f32 %v177_v46, %v174_v56  ;;  %v215_v53 = vsel %vm211_vm3, %v210_v55, %v204_v15  ;;  %v188_v31 = vmul.f32 %v180_v16, %v171_v19  ;;  %v213_v56 = vsel %vm211_vm3, %v967_v42, %v208_v26 }
 0x12c   :  { %v227_v30 = vmul.f32 %v219_v13, %v215_v53  ;;  %v212_v34 = vsel %vm211_vm3, %v208_v26, %v210_v55  ;;  %v305_v16 = vperm.slane %v1017_v10, 0  ;;  %v308_v0 = vperm.slane %v1017_v10, 3 }
 0x12d   :  { %v195_v60 = vmul.f32 %v936_v35, %v185_v58  ;;  %v265_v58 = vperm.slane %v1004_v63, 3  ;;  %v343_v42 = vsel %vm340_vm5, %v997_v61, %v1046_v39  ;;  %v198_v55 = vmul.f32 %v936_v35, %v188_v31 }
 0x12e   :  { %v238_v26 = vmul.f32 %v965_v41, %v227_v30  ;;  %v197_v18 = vmul.f32 %v936_v35, %v187_v37  ;;  %v230_v53 = vmul.f32 %v222_v52, %v212_v34  ;;  %v307_v31 = vperm.slane %v1017_v10, 2 }
 0x12f   :  { %v199_v11 = vadd.f32 %v195_v60, %v908_v28  ;;  %v1070_v28 = vld [vmem:[%s1258_s4 + $0x14] sm:$0xf]  ;;  %v270_v60 = vmul.f32 %v262_v23, %v258_v29  ;;  %v394_v29 = vperm.slane %v1058_v12, 3  ;;  %v229_v54 = vmul.f32 %v221_v51, %v213_v56 }
 0x130   :  { %v348_v46 = vperm.slane %v1070_v28, 0  ;;  %v350_v35 = vperm.slane %v1070_v28, 2  ;;  %v202_v52 = vadd.f32 %v198_v55, %v159_v24  ;;  %v201_v2 = vadd.f32 %v197_v18, %v158_v21  ;;  %v1157_v18 = vld [vmem:[%s1258_s4 + $0x1c] sm:$0xf] }
 0x131   :  { %v251_v17 = vpop.permute.xlu1 %250  ;;  %v242_v30 = vadd.f32 %v238_v26, %v199_v11  ;;  %v241_v5 = vmul.f32 %v965_v41, %v230_v53  ;;  %v351_v10 = vperm.slane %v1070_v28, 3  ;;  %v342_v53 = vsel %vm340_vm5, %v1046_v39, %v1051_v59 }
 0x132   :  { %v294_v20 = vpop.permute.xlu0 %293  ;;  %v255_v13 = vsel %vm254_vm2, %v251_v17, %v253_v40  ;;  %v256_v63 = vsel %vm254_vm2, %v999_v62, %v251_v17  ;;  %v281_v62 = vmul.f32 %v942_v36, %v270_v60  ;;  %v356_v37 = vmul.f32 %v348_v46, %v343_v42  ;;  %v1139_v60 = vld [vmem:[%s1258_s4 + $0x20] sm:$0xf] }
 0x133   :  { %v273_v15 = vmul.f32 %v265_v58, %v255_v13  ;;  %v272_v17 = vmul.f32 %v264_v49, %v256_v63  ;;  %v240_v46 = vmul.f32 %v965_v41, %v229_v54  ;;  %v245_v58 = vadd.f32 %v241_v5, %v202_v52 }
 0x134   :  { %v285_v56 = vadd.f32 %v281_v62, %v242_v30  ;;  %v387_v5 = vsel %vm383_vm6, %v382_v25, %v1042_v32  ;;  %v392_v62 = vperm.slane %v1058_v12, 1  ;;  %v1270_v52 = vperm.slane %v1058_v12, 0 }
 0x135   :  { %v284_v11 = vmul.f32 %v942_v36, %v273_v15  ;;  %v283_v21 = vmul.f32 %v942_v36, %v272_v17  ;;  %v466_v15 = vpop.permute.xlu2 %465 }
 0x137   :  { %v288_v26 = vadd.f32 %v284_v11, %v245_v58 }
 0x139   :  { %v296_v40 = vpop.permute.xlu1 %295 }
 0x13a   :  { %v339_v19 = vpop.permute.xlu0 %338  ;;  %v298_v22 = vsel %vm297_vm4, %v294_v20, %v296_v40  ;;  %v301_v23 = vsel %vm297_vm4, %v296_v40, %v1027_v14  ;;  %v299_v14 = vsel %vm297_vm4, %v973_v45, %v294_v20  ;;  %v393_v45 = vperm.slane %v1058_v12, 2 }
 0x13b   :  { %v313_v34 = vmul.f32 %v305_v16, %v301_v23  ;;  %v316_v3 = vmul.f32 %v308_v0, %v298_v22  ;;  %v341_v51 = vsel %vm340_vm5, %v1051_v59, %v339_v19  ;;  %v344_v49 = vsel %vm340_vm5, %v339_v19, %v997_v61 }
 0x13c   :  { %v367_v20 = vmul.f32 %v971_v44, %v356_v37  ;;  %v315_v36 = vmul.f32 %v307_v31, %v299_v14  ;;  %v244_v16 = vadd.f32 %v240_v46, %v201_v2  ;;  %v358_v0 = vmul.f32 %v350_v35, %v341_v51 }
 0x13d   :  { %v324_v24 = vmul.f32 %v969_v43, %v313_v34  ;;  %v327_v13 = vmul.f32 %v969_v43, %v316_v3  ;;  %v359_v55 = vmul.f32 %v351_v10, %v344_v49  ;;  %v477_v3 = vperm.slane %v1139_v60, 0 }
 0x13e   :  { %v287_v40 = vadd.f32 %v283_v21, %v244_v16  ;;  %v478_v2 = vperm.slane %v1139_v60, 1  ;;  %v402_v23 = vmul.f32 %v394_v29, %v387_v5  ;;  %v326_v30 = vmul.f32 %v969_v43, %v315_v36  ;;  %v464_v21 = vpop.permute.xlu2 %463 }
 0x13f   :  { %v328_v41 = vadd.f32 %v324_v24, %v285_v56  ;;  %v331_v19 = vadd.f32 %v327_v13, %v288_v26  ;;  %v369_v31 = vmul.f32 %v971_v44, %v358_v0  ;;  %v370_v17 = vmul.f32 %v971_v44, %v359_v55 }
 0x140   :  { %v437_v35 = vperm.slane %v1157_v18, 3  ;;  %v1269_v37 = vperm.slane %v1070_v28, 1  ;;  %v330_v59 = vadd.f32 %v326_v30, %v287_v40  ;;  %v479_v29 = vperm.slane %v1139_v60, 2 }
 0x141   :  { %v380_v54 = vpop.permute.xlu1 %379  ;;  %v1149_v63 = vadd.f32 %v367_v20, %v328_v41  ;;  %v480_v43 = vperm.slane %v1139_v60, 3  ;;  %v374_v14 = vadd.f32 %v370_v17, %v331_v19  ;;  %v413_v56 = vmul.f32 %v957_v38, %v402_v23 }
 0x142   :  { %v1142_v42 = vpop.permute.xlu0 %422  ;;  %v384_v61 = vsel %vm383_vm6, %v380_v54, %v382_v25  ;;  %v386_v25 = vsel %vm383_vm6, %v1042_v32, %v1012_v1  ;;  %v436_v32 = vperm.slane %v1157_v18, 2  ;;  %v357_v39 = vmul.f32 %v1269_v37, %v342_v53 }
 0x143   :  { %v401_v22 = vmul.f32 %v393_v45, %v384_v61  ;;  %v399_v34 = vmul.f32 %v1270_v52, %v386_v25  ;;  %v385_v10 = vsel %vm383_vm6, %v1012_v1, %v380_v54  ;;  %v373_v28 = vadd.f32 %v369_v31, %v330_v59 }
 0x144   :  { %v368_v58 = vmul.f32 %v971_v44, %v357_v39  ;;  %v400_v60 = vmul.f32 %v392_v62, %v385_v10  ;;  %v417_v36 = vadd.f32 %v413_v56, %v374_v14  ;;  %v471_v61 = vsel %vm469_vm7, %v464_v21, %v466_v15 }
 0x145   :  { %v412_v11 = vmul.f32 %v957_v38, %v401_v22  ;;  %v472_v5 = vsel %vm469_vm7, %v1039_v27, %v464_v21  ;;  %v434_v26 = vperm.slane %v1157_v18, 0  ;;  %v435_v44 = vperm.slane %v1157_v18, 1 }
 0x146   :  { %v410_v19 = vmul.f32 %v957_v38, %v399_v34  ;;  %v372_v22 = vadd.f32 %v368_v58, %v1044_v33  ;;  %v485_v31 = vmul.f32 %v477_v3, %v472_v5  ;;  %v486_v62 = vmul.f32 %v478_v2, %v471_v61 }
 0x147   :  { %v416_v54 = vadd.f32 %v412_v11, %v373_v28 }
 0x148   :  { %v414_v3 = vadd.f32 %v410_v19, %v1149_v63  ;;  %v496_v50 = vmul.f32 %v977_v48, %v485_v31 }
 0x149   :  { %v425_v51 = vpop.permute.xlu1 %424 }
 0x14a   :  { %v468_v24 = vpop.permute.xlu0 %467  ;;  %v427_v46 = vsel %vm426_vm8, %v1142_v42, %v425_v51  ;;  %v430_v12 = vsel %vm426_vm8, %v425_v51, %v992_v57 }
 0x14b   :  { %v470_v49 = vsel %vm469_vm7, %v466_v15, %v468_v24  ;;  %v473_v1 = vsel %vm469_vm7, %v468_v24, %v1039_v27  ;;  %v444_v45 = vmul.f32 %v436_v32, %v427_v46  ;;  %v445_v20 = vmul.f32 %v437_v35, %v430_v12 }
 0x14c   :  { %v487_v13 = vmul.f32 %v479_v29, %v470_v49  ;;  %v488_v41 = vmul.f32 %v480_v43, %v473_v1  ;;  %v411_v15 = vmul.f32 %v957_v38, %v400_v60  ;;  %v514_v38 = vld [vmem:[%s1260_s6] sm:$0xff] }
 0x14d   :  { %v455_v16 = vmul.f32 %v975_v47, %v444_v45  ;;  %v456_v0 = vmul.f32 %v975_v47, %v445_v20 }
 0x14e   :  { %v498_v55 = vmul.f32 %v977_v48, %v487_v13  ;;  %v499_v40 = vmul.f32 %v977_v48, %v488_v41  ;;  %v415_v2 = vadd.f32 %v411_v15, %v372_v22  ;;  %v526_v41 = vpop.permute.xlu2 %525 }
 0x14f   :  { %v459_v25 = vadd.f32 %v455_v16, %v416_v54  ;;  %v460_v53 = vadd.f32 %v456_v0, %v417_v36 }
 0x151   :  { %v502_v23 = vadd.f32 %v498_v55, %v459_v25  ;;  %v503_v30 = vadd.f32 %v499_v40, %v460_v53  ;;  %v421_v27 = vpop.permute.xlu1 %420  ;;  %v1273_v40 = vld [vmem:[#allocation9_spill] sm:$0xff] }
 0x152   :  { %v508_v18 = vpop.permute.xlu0 %507  ;;  %v428_v17 = vsel %vm426_vm8, %v421_v27, %v1142_v42  ;;  %v429_v32 = vsel %vm426_vm8, %v992_v57, %v421_v27  ;;  %v497_v57 = vmul.f32 %v977_v48, %v486_v62 }
 0x153   :  { %v512_v35 = vadd.f32 %v508_v18, %v502_v23  ;;  %v513_v33 = vadd.f32 %v508_v18, %v503_v30  ;;  %v442_v37 = vmul.f32 %v434_v26, %v429_v32  ;;  %v443_v39 = vmul.f32 %v435_v44, %v428_v17 }
 0x155   :  { %v453_v59 = vmul.f32 %v975_v47, %v442_v37  ;;  %v454_v29 = vmul.f32 %v975_v47, %v443_v39  ;;  %708 = vmatpush.msk.msrb.mxu2 %vm535_vm9, %v512_v35  ;;  %711 = vmatpush.msk.msrb.mxu3 %vm535_vm9, %v513_v33  ;;  %v515_v47 = vld [vmem:[%s1260_s6 + $0x8] sm:$0xff]  ;;  %s794_s6 = smov [#allocation5]  }
 0x156   :  { %709 = vmatmul.msk.f32.vlgmr.msrb.gmra.mxu2 %vm528_vm10, %v514_v38  ;;  %712 = vmatmul.msk.f32.vlgmr.msrb.gmra.mxu3 %vm528_vm10, %v514_v38  ;;  %s668_s15 = sshll.u32 %s794_s6, 4  ;;  %s669_s15 = int_to_ptr.vmem [resolvable:$true] %s668_s15 }
 0x157   :  { %v457_v42 = vadd.f32 %v453_v59, %v414_v3  ;;  %v458_v43 = vadd.f32 %v454_v29, %v415_v2 }
 0x159   :  { %v500_v63 = vadd.f32 %v496_v50, %v457_v42  ;;  %v501_v52 = vadd.f32 %v497_v57, %v458_v43  ;;  %v521_v48 = vpop.permute.xlu1 %520 }
 0x15b   :  { %v510_v34 = vadd.f32 %v508_v18, %v500_v63  ;;  %v511_v14 = vadd.f32 %v508_v18, %v501_v52 }
 0x15d   :  { %702 = vmatpush.msk.msrb.mxu0 %vm535_vm9, %v510_v34  ;;  %705 = vmatpush.msk.msrb.mxu1 %vm535_vm9, %v511_v14 }
 0x15e   :  { %703 = vmatmul.msk.f32.vlgmr.msrb.gmra.mxu0 %vm528_vm10, %v514_v38  ;;  %706 = vmatmul.msk.f32.vlgmr.msrb.gmra.mxu1 %vm528_vm10, %v514_v38 }
 0x15f   :  { %710 = vmatmul.msk.f32.gmra.mxu2 %vm528_vm10, %v515_v47  ;;  %713 = vmatmul.msk.f32.gmra.mxu3 %vm528_vm10, %v515_v47 }
 0x166   :  { %704 = vmatmul.msk.f32.gmra.mxu0 %vm528_vm10, %v515_v47  ;;  %707 = vmatmul.msk.f32.gmra.mxu1 %vm528_vm10, %v515_v47 }
 0x1d9   :  { %v611_v10 = vpop.f32.mrf.mxu2  ;;  %v634_v11 = vpop.f32.mrf.mxu3 }
 0x1da   :  { %v612_v51 = vadd.f32 %v611_v10, %v521_v48  ;;  %v635_v56 = vadd.f32 %v634_v11, %v521_v48 }
 0x1db   :  { %v565_v28 = vpop.f32.mrf.mxu0  ;;  %v588_v24 = vpop.f32.mrf.mxu1 }
 0x1dc   :  { %v642_v46 = vadd.f32 %v612_v51, %v864_v8  ;;  %v643_v12 = vadd.f32 %v635_v56, %v866_v9  ;;  %v566_v21 = vadd.f32 %v565_v28, %v521_v48  ;;  %v589_v49 = vadd.f32 %v588_v24, %v521_v48 }
 0x1de   :  { %v650_v1 = vmax.f32 %v642_v46, 0.0  ;;  %v651_v45 = vmax.f32 %v643_v12, 0.0  ;;  %v640_v20 = vadd.f32 %v566_v21, %v858_v6  ;;  %v641_v58 = vadd.f32 %v589_v49, %v862_v7  ;;  %v1271_v6 = vld [vmem:[#allocation10_spill] sm:$0xff]  ;;  %v1272_v7 = vld [vmem:[#allocation8_spill] sm:$0xff] }
 0x1e0   :  { %658 = vst [vmem:[#allocation5 + $0x10] sm:$0xff] %v650_v1  ;;  %v648_v60 = vmax.f32 %v640_v20, 0.0  ;;  %v649_v13 = vmax.f32 %v641_v58, 0.0 }
 0x1e1   :  { %659 = vst [vmem:[#allocation5 + $0x18] sm:$0xff] %v651_v45 }
 0x1e2   :  { %656 = vst [vmem:[#allocation5] sm:$0xff] %v648_v60  ;;  %v614_v54 = vpop.f32.mrf.mxu2  ;;  %v637_v36 = vpop.f32.mrf.mxu3 }
 0x1e3   :  { %657 = vst [vmem:[#allocation5 + $0x8] sm:$0xff] %v649_v13  ;;  %v615_v8 = vadd.f32 %v614_v54, %v526_v41  ;;  %v638_v16 = vadd.f32 %v637_v36, %v526_v41  ;;  %v568_v9 = vpop.f32.mrf.mxu0  ;;  %v591_v0 = vpop.f32.mrf.mxu1 }
 0x1e4   :  { %v569_v61 = vadd.f32 %v568_v9, %v526_v41  ;;  %v592_v5 = vadd.f32 %v591_v0, %v526_v41 }
 0x1e5   :  { %v646_v26 = vadd.f32 %v615_v8, %v854_v4  ;;  %v647_v44 = vadd.f32 %v638_v16, %v1271_v6 }
 0x1e6   :  { %v644_v55 = vadd.f32 %v569_v61, %v1272_v7  ;;  %v645_v25 = vadd.f32 %v592_v5, %v1273_v40 }
 0x1e7   :  { %v654_v53 = vmax.f32 %v646_v26, 0.0  ;;  %v655_v19 = vmax.f32 %v647_v44, 0.0 }
 0x1e8   :  { %v652_v22 = vmax.f32 %v644_v55, 0.0  ;;  %v653_v15 = vmax.f32 %v645_v25, 0.0 }
 0x1e9   :  { %662 = vst [vmem:[#allocation5 + $0x30] sm:$0xff] %v654_v53 }
 0x1ea   :  { %663 = vst [vmem:[#allocation5 + $0x38] sm:$0xff] %v655_v19 }
 0x1eb   :  { %660 = vst [vmem:[#allocation5 + $0x20] sm:$0xff] %v652_v22 }
 0x1ec   :  { %661 = vst [vmem:[#allocation5 + $0x28] sm:$0xff] %v653_v15 }
 0x1ed   :  { %676 = dma.vmem_to_hbm [thread:$0]  %s669_s15, 1024, %s671_s18, [#allocation4], %s783_s10, %s783_s10, %s784_s11  }
 0x1ee   :  { %780 = dma.done.wait [#allocation4], 1024  }
 0x1ef   :  { %781 = vsyncadd [#allocation4], 4294966272 }
 0x1f0   :  { %681 = vsyncpa [#allocation3], 1 }
 0x1f1   :  { %682 = vsyncpa [#allocation4], 1 }

</bundles_post_ra>
